<compile_context>
chip_gen: v7x
topology: tpu7x:2x2x1
jax: 0.10.0
libtpu: 0.0.40
codegen_flags: <defaults>
</compile_context>

<pallas_src>
import math

import jax
import jax.numpy as jnp
from jax.experimental import pallas as pl
from jax.experimental.pallas import tpu as pltpu


def _bilinear_kernel(x1_ref, x2_ref, w2_ref, b_ref, o_ref):
    # x1_ref: (TB, I1)   x2_ref: (TB, I2)   w2_ref: (I1, TO*I2)
    # b_ref : (1, TO)    o_ref : (TB, TO)
    TB, I2 = x2_ref.shape
    TO = o_ref.shape[1]

    x1 = x1_ref[...]
    x2 = x2_ref[...]

    # (TB, I1) @ (I1, TO*I2) -> (TB, TO*I2)   [MXU, f32 accumulate]
    t = jnp.dot(x1, w2_ref[...], preferred_element_type=jnp.float32)

    # Lane-preserving (sublane split only) when I2 % 128 == 0; still correct
    # otherwise, just becomes a relayout copy.
    t = t.reshape(TB, TO, I2)

    # y[b, o] = sum_j t[b, o, j] * x2[b, j]   [VPU multiply + XLU lane reduce]
    y = jnp.sum(t * x2[:, None, :].astype(jnp.float32), axis=-1)
    y = y + b_ref[...].astype(jnp.float32)

    # Dropout: eval-mode identity.
    o_ref[...] = y.astype(o_ref.dtype)


def prepare_bilinear_weight(weight):
    """One-time weight re-layout (hoist out of the per-call path; cache the result).

    weight: (O, I1, I2) -> w2: (I1, O*I2) with w2[i, o*I2 + j] == weight[o, i, j].
    Optionally cast the result to bfloat16 here to halve streamed weight bytes.
    """
    O, I1, I2 = weight.shape
    return jnp.transpose(weight, (1, 0, 2)).reshape(I1, O * I2)


def _choose_tiles(B, I1, I2, O, w_itemsize):
    # Batch tile: full batch up to 256 rows (MXU-friendly M); larger batches tile.
    TB = B if B <= 256 else 256
    # Output tile: whole O if small; otherwise a multiple of 128 sized so one weight
    # tile stays <= ~8 MiB (double-buffered: ~16 MiB) — fits comfortably on v5e/v6e/v7x.
    if O <= 128:
        TO = O
    else:
        budget = 8 * 1024 * 1024
        to_max = max(128, (budget // max(1, I1 * I2 * w_itemsize)) // 128 * 128)
        TO = O if O <= to_max else to_max
    return TB, TO


def bilinear_forward(x1, x2, w2, bias, *, d_out, out_dtype=None):
    """x1:(B,I1)  x2:(B,I2)  w2:(I1, d_out*I2) from prepare_bilinear_weight()
    bias:(d_out,) or None  ->  (B, d_out)"""
    B, I1 = x1.shape
    B2, I2 = x2.shape
    assert B == B2, "x1/x2 batch mismatch"
    O = d_out
    assert w2.shape == (I1, O * I2), "w2 must come from prepare_bilinear_weight()"

    if bias is None:
        bias = jnp.zeros((O,), dtype=jnp.float32)
    b2 = bias.reshape(1, O)

    out_dtype = out_dtype or x1.dtype
    w_itemsize = jnp.dtype(w2.dtype).itemsize
    TB, TO = _choose_tiles(B, I1, I2, O, w_itemsize)
    nb = pl.cdiv(B, TB)
    no = pl.cdiv(O, TO)

    # Explicit VMEM budget so the default scoped limit (16 MiB v5e / 32 MiB v6e,v7x)
    # never disables double-buffering, while staying under v7x's 64 MiB physical VMEM.
    tile_bytes = (
        I1 * TO * I2 * w_itemsize                          # weight tile (dominant)
        + TB * I1 * jnp.dtype(x1.dtype).itemsize           # x1 tile
        + TB * I2 * jnp.dtype(x2.dtype).itemsize           # x2 tile
        + TO * jnp.dtype(bias.dtype).itemsize              # bias tile
        + TB * TO * jnp.dtype(out_dtype).itemsize          # out tile
    )
    vmem_limit = int(min(max(2 * tile_bytes + (4 << 20), 16 << 20), 48 << 20))

    cost = pl.CostEstimate(
        flops=2 * B * I1 * O * I2 + 2 * B * O * I2,
        transcendentals=0,
        bytes_accessed=(
            w2.size * w_itemsize
            + x1.size * jnp.dtype(x1.dtype).itemsize
            + x2.size * jnp.dtype(x2.dtype).itemsize
            + bias.size * jnp.dtype(bias.dtype).itemsize
            + B * O * jnp.dtype(out_dtype).itemsize
        ),
    )

    # Grid: output-tile axis OUTER, batch-tile axis INNER -> each streamed weight
    # tile is fetched once and reused across all batch tiles; Pallas double-buffers
    # the weight DMA under the MXU work.
    return pl.pallas_call(
        _bilinear_kernel,
        out_shape=jax.ShapeDtypeStruct((B, O), out_dtype),
        grid_spec=pltpu.PrefetchScalarGridSpec(
            num_scalar_prefetch=0,
            grid=(no, nb),
            in_specs=[
                pl.BlockSpec((TB, I1), lambda o, b: (b, 0)),        # x1
                pl.BlockSpec((TB, I2), lambda o, b: (b, 0)),        # x2
                pl.BlockSpec((I1, TO * I2), lambda o, b: (0, o)),   # w2 (streamed)
                pl.BlockSpec((1, TO), lambda o, b: (0, o)),         # bias
            ],
            out_specs=pl.BlockSpec((TB, TO), lambda o, b: (b, o)),
        ),
        compiler_params=pltpu.CompilerParams(
            dimension_semantics=("parallel", "parallel"),
            vmem_limit_bytes=vmem_limit,
        ),
        cost_estimate=cost,
    )(x1, x2, w2, b2)


def reference_bilinear(x1, x2, weight, bias):
    # y[b,o] = sum_{i,j} x1[b,i] W[o,i,j] x2[b,j] + bias[o]
    return jnp.einsum("bi,oij,bj->bo", x1, weight, x2) + bias[None, :]


if __name__ == "__main__":
    # Shapes consistent with the module: in_1=32, in_2=128, d_out=16, batch=8
    B, IN1, IN2, DOUT = 8, 32, 128, 16
    dropout_p = 0.1  # inert in eval mode

    key = jax.random.PRNGKey(0)
    k_x1, k_x2, k_w, k_b = jax.random.split(key, 4)

    x1 = jax.random.normal(k_x1, (B, IN1), dtype=jnp.float32)
    x2 = jax.random.normal(k_x2, (B, IN2), dtype=jnp.float32)

    # xavier_normal_ on weight (d_out, in1, in2): fan_in = in1*in2, fan_out = d_out*in2
    fan_in, fan_out = IN1 * IN2, DOUT * IN2
    xavier_std = math.sqrt(2.0 / (fan_in + fan_out))
    weight = xavier_std * jax.random.normal(k_w, (DOUT, IN1, IN2), dtype=jnp.float32)

    # nn.Bilinear default bias init: uniform(-1/sqrt(in1), 1/sqrt(in1))
    bound = 1.0 / math.sqrt(IN1)
    bias = jax.random.uniform(k_b, (DOUT,), dtype=jnp.float32, minval=-bound, maxval=bound)

    # One-time weight re-layout (would be cached at module init in real use).
    w2 = jax.block_until_ready(prepare_bilinear_weight(weight))

    out = bilinear_forward(x1, x2, w2, bias, d_out=DOUT)
    out = jax.block_until_ready(out)

    ref = reference_bilinear(x1, x2, weight, bias)
    assert out.shape == (B, DOUT)
    assert jnp.allclose(out, ref, atol=1e-4, rtol=1e-4), "mismatch vs reference"

    print("KERNEL_OK")
</pallas_src>

<mosaic_0001>
module attributes {stable_mosaic.version = 11 : i64} {
  func.func @_bilinear_kernel(%arg0: i32, %arg1: i32, %arg2: memref<8x32xf32, #tpu.memory_space<vmem>>, %arg3: memref<8x128xf32, #tpu.memory_space<vmem>>, %arg4: memref<32x2048xf32, #tpu.memory_space<vmem>>, %arg5: memref<1x16xf32, #tpu.memory_space<vmem>>, %arg6: memref<8x16xf32, #tpu.memory_space<vmem>>) attributes {dimension_semantics = [#tpu.dimension_semantics<parallel>, #tpu.dimension_semantics<parallel>], iteration_bounds = array<i64: 1, 1>, scalar_prefetch = 0 : i64, scratch_operands = 0 : i64, tpu.core_type = #tpu.core_type<tc>, window_params = [{transform_indices = @transform_0, window_bounds = array<i64: 8, 32>}, {transform_indices = @transform_1, window_bounds = array<i64: 8, 128>}, {transform_indices = @transform_2, window_bounds = array<i64: 32, 2048>}, {transform_indices = @transform_3, window_bounds = array<i64: 1, 16>}, {transform_indices = @transform_4, window_bounds = array<i64: 8, 16>}]} {
    %c0 = arith.constant 0 : index
    %c0_0 = arith.constant 0 : index
    %0 = vector.load %arg2[%c0, %c0_0] : memref<8x32xf32, #tpu.memory_space<vmem>>, vector<8x32xf32>
    %c0_1 = arith.constant 0 : index
    %c0_2 = arith.constant 0 : index
    %1 = vector.load %arg3[%c0_1, %c0_2] : memref<8x128xf32, #tpu.memory_space<vmem>>, vector<8x128xf32>
    %c0_3 = arith.constant 0 : index
    %c0_4 = arith.constant 0 : index
    %2 = vector.load %arg4[%c0_3, %c0_4] : memref<32x2048xf32, #tpu.memory_space<vmem>>, vector<32x2048xf32>
    %cst = arith.constant dense<0.000000e+00> : vector<8x2048xf32>
    %3 = tpu.matmul %0, %2, %cst {dimension_numbers = #tpu.dot_dimension_numbers<[1], [0], [0], [1], [0, 0, 1, 1], [], []>} : vector<8x32xf32>, vector<32x2048xf32>, vector<8x2048xf32> -> vector<8x2048xf32>
    %4 = vector.shape_cast %3 : vector<8x2048xf32> to vector<8x16x128xf32>
    %5 = vector.shape_cast %1 : vector<8x128xf32> to vector<8x1x128xf32>
    %6 = vector.broadcast %5 : vector<8x1x128xf32> to vector<8x16x128xf32>
    %7 = arith.mulf %4, %6 : vector<8x16x128xf32>
    %cst_5 = arith.constant dense<0.000000e+00> : vector<8x16xf32>
    %8 = vector.multi_reduction <add>, %7, %cst_5 [2] : vector<8x16x128xf32> to vector<8x16xf32>
    %c0_6 = arith.constant 0 : index
    %c0_7 = arith.constant 0 : index
    %9 = vector.load %arg5[%c0_6, %c0_7] : memref<1x16xf32, #tpu.memory_space<vmem>>, vector<1x16xf32>
    %10 = vector.broadcast %9 : vector<1x16xf32> to vector<8x16xf32>
    %11 = arith.addf %8, %10 : vector<8x16xf32>
    %c0_8 = arith.constant 0 : index
    %c0_9 = arith.constant 0 : index
    %12 = vector.load %arg6[%c0_8, %c0_9] : memref<8x16xf32, #tpu.memory_space<vmem>>, vector<8x16xf32>
    tpu.vector_store %arg6[%c0_8, %c0_9], %11 {strides = array<i32>} : memref<8x16xf32, #tpu.memory_space<vmem>>, vector<8x16xf32>,
    return
  }
  func.func @transform_0(%arg0: i32, %arg1: i32) -> (i32, i32) {
    %c0_i32 = arith.constant 0 : i32
    %c0_i32_0 = arith.constant 0 : i32
    return %arg1, %c0_i32 : i32, i32
  }
  func.func @transform_1(%arg0: i32, %arg1: i32) -> (i32, i32) {
    %c0_i32 = arith.constant 0 : i32
    %c0_i32_0 = arith.constant 0 : i32
    return %arg1, %c0_i32 : i32, i32
  }
  func.func @transform_2(%arg0: i32, %arg1: i32) -> (i32, i32) {
    %c0_i32 = arith.constant 0 : i32
    %c0_i32_0 = arith.constant 0 : i32
    return %c0_i32, %arg0 : i32, i32
  }
  func.func @transform_3(%arg0: i32, %arg1: i32) -> (i32, i32) {
    %c0_i32 = arith.constant 0 : i32
    %c0_i32_0 = arith.constant 0 : i32
    return %c0_i32, %arg0 : i32, i32
  }
  func.func @transform_4(%arg0: i32, %arg1: i32) -> (i32, i32) {
    %c0_i32 = arith.constant 0 : i32
    return %arg1, %arg0 : i32, i32
  }
}

</mosaic_0001>

<bundles_post_ra>
// kernel: tpu_custom_call.1
= control target key start
LH: loop header
LB: loop body
LE: loop exit
PB: predicated region body
PF: predicated region fallthrough
CT: control target
= control target key end

     0   :  { %9 = vsyncpa [#allocation3], 0  ;;  %s1715_s0 = inlined_call_operand.hbm [shape: f32[8,32], index: 0, kind: input, shape index: {}]   ;;  %s1716_s1 = inlined_call_operand.hbm [shape: f32[8,128], index: 1, kind: input, shape index: {}]   ;;  %s1717_s2 = inlined_call_operand.hbm [shape: f32[32,2048], index: 2, kind: input, shape index: {}]   ;;  %s1718_s3 = inlined_call_operand.vmem [shape: f32[1,16], index: 3, kind: input, shape index: {}]   ;;  %s1719_s4 = inlined_call_operand.hbm [shape: f32[8,16], index: 4, kind: output, shape index: {}]  }
   0x1   :  { %10 = vsyncpa [#allocation6], 0 }
   0x2   :  { %11 = vsyncpa [#allocation4], 0  ;;  %s1488_s15 = smov [#allocation5]   ;;  %s1489_s17 = smov [#allocation2]  }
   0x3   :  { %s28_s16 = sshll.u32 %s1488_s15, 4  ;;  %s18_s18 = sshll.u32 %s1489_s17, 4  ;;  %s29_s16 = int_to_ptr.vmem [resolvable:$true] %s28_s16  ;;  %s19_s18 = int_to_ptr.vmem [resolvable:$true] %s18_s18 }
   0x4   :  { %s1394_s21 = scalar_lea.hbm %s1716_s1, 128 }
   0x5   :  { %p1395_p0 = scmp.ne.s32.totalorder %s1716_s1, %s1394_s21  ;;  %p1398_p1 = scmp.lt.u32.totalorder %s1394_s21, %s1716_s1 }
   0x7   :  { %p1400_p2 = pnand %p1398_p1, %p1395_p0 }
   0x9   :  { %1403 = shalt.err (!%p1400_p2)
}
   0xa   :  { %s1404_s26 = scalar_lea.vmem %s29_s16, 128  ;;  %p1409_p4 = scmp.lt.s32.totalorder %s29_s16, %s29_s16 }
   0xb   :  { %p1405_p3 = scmp.ne.s32.totalorder %s29_s16, %s1404_s26  ;;  %p1410_p5 = scmp.lt.s32.totalorder %s1404_s26, %s1404_s26 }
   0xd   :  { %p1411_p6 = por %p1410_p5, %p1409_p4 }
   0xf   :  { %p1412_p7 = pnand %p1411_p6, %p1405_p3 }
  0x11   :  { %1415 = shalt.err (!%p1412_p7)
}
  0x12   :  { %31 = dma.hbm_to_vmem [thread:$0]  %s1716_s1, 128, %s29_s16, [#allocation6]  }
  0x13   :  { %s1416_s5 = scalar_lea.hbm %s1715_s0, 128 }
  0x14   :  { %p1417_p8 = scmp.ne.s32.totalorder %s1715_s0, %s1416_s5  ;;  %p1420_p9 = scmp.lt.u32.totalorder %s1416_s5, %s1715_s0 }
  0x16   :  { %p1422_p10 = pnand %p1420_p9, %p1417_p8 }
  0x18   :  { %1425 = shalt.err (!%p1422_p10)
}
  0x19   :  { %s1426_s10 = scalar_lea.vmem %s19_s18, 128  ;;  %p1431_p12 = scmp.lt.s32.totalorder %s19_s18, %s19_s18 }
  0x1a   :  { %p1427_p11 = scmp.ne.s32.totalorder %s19_s18, %s1426_s10  ;;  %p1432_p13 = scmp.lt.s32.totalorder %s1426_s10, %s1426_s10 }
  0x1c   :  { %p1433_p0 = por %p1432_p13, %p1431_p12 }
  0x1e   :  { %p1434_p1 = pnand %p1433_p0, %p1427_p11 }
  0x20   :  { %1437 = shalt.err (!%p1434_p1)
}
  0x21   :  { %21 = dma.hbm_to_vmem [thread:$0]  %s1715_s0, 128, %s19_s18, [#allocation3]  }
  0x22   :  { %s1490_s12 = smov [#allocation7]   ;;  %s1438_s16 = scalar_lea.hbm %s1717_s2, 8192 }
  0x23   :  { %s37_s13 = sshll.u32 %s1490_s12, 4  ;;  %p1439_p2 = scmp.ne.s32.totalorder %s1717_s2, %s1438_s16  ;;  %s38_s13 = int_to_ptr.vmem [resolvable:$true] %s37_s13 }
  0x24   :  { %p1442_p3 = scmp.lt.u32.totalorder %s1438_s16, %s1717_s2 }
  0x26   :  { %p1444_p4 = pnand %p1442_p3, %p1439_p2 }
  0x28   :  { %1447 = shalt.err (!%p1444_p4)
}
  0x29   :  { %s1448_s22 = scalar_lea.vmem %s38_s13, 8192  ;;  %p1453_p6 = scmp.lt.s32.totalorder %s38_s13, %s38_s13 }
  0x2a   :  { %p1449_p5 = scmp.ne.s32.totalorder %s38_s13, %s1448_s22  ;;  %p1454_p7 = scmp.lt.s32.totalorder %s1448_s22, %s1448_s22 }
  0x2c   :  { %p1455_p8 = por %p1454_p7, %p1453_p6 }
  0x2e   :  { %p1456_p9 = pnand %p1455_p8, %p1449_p5 }
  0x30   :  { %1459 = shalt.err (!%p1456_p9)
}
  0x31   :  { %s1491_s0 = smov 2048   ;;  %s1492_s18 = smov 128  }
  0x32   :  { %43 = dma.hbm_to_vmem [thread:$0]  %s1717_s2, 8192, %s38_s13, [#allocation6], %s1491_s0, %s1491_s0, %s1492_s18  }
  0x33   :  { %1482 = dma.done.wait [#allocation3], 128  }
  0x34   :  { %1483 = vsyncadd [#allocation3], 4294967168 }
  0x35   :  { %1484 = dma.done.wait [#allocation6], 8320  }
  0x36   :  { %1485 = vsyncadd [#allocation6], 4294958976  ;;  %v1493_v0 = vmov 0.0   ;;  %v58_v1 = vld [vmem:[#allocation7 + $0x8] sm:$0xff]  ;;  %v60_v3 = vld [vmem:[#allocation7 + $0x18] sm:$0xff]  ;;  %vm121_vm0 = vcmask 261120  }
  0x37   :  { %189 = vmatprep.mubr.f32.mxu0 %v1493_v0  ;;  %260 = vmatprep.mubr.f32.mxu1 %v1493_v0  ;;  %v74_v2 = vld [vmem:[#allocation7 + $0x88] sm:$0xff]  ;;  %v76_v5 = vld [vmem:[#allocation7 + $0x98] sm:$0xff]  ;;  %v57_v6 = vld [vmem:[#allocation7] sm:$0xff]  ;;  %vm1209_vm1 = vcmask 130112   ;;  %vm1274_vm2 = vcmask 1041409   ;;  %vm1276_vm3 = vcmask 1042434  }
  0x38   :  { %v1316_v4 = vpack.c.bf16 %v74_v2, %v58_v1  ;;  %v73_v7 = vld [vmem:[#allocation7 + $0x80] sm:$0xff]  ;;  %v1324_v8 = vpack.c.bf16 %v76_v5, %v60_v3  ;;  %v59_v10 = vld [vmem:[#allocation7 + $0x10] sm:$0xff]  ;;  %v90_v12 = vld [vmem:[#allocation7 + $0x108] sm:$0xff]  ;;  %vm1278_vm4 = vcmask 1043459   ;;  %vm1280_vm5 = vcmask 1044484  }
  0x39   :  { %v1318_v9 = vpack.c.bf16 %v73_v7, %v57_v6  ;;  %v75_v11 = vld [vmem:[#allocation7 + $0x90] sm:$0xff]  ;;  %v106_v14 = vld [vmem:[#allocation7 + $0x188] sm:$0xff]  ;;  %v92_v15 = vld [vmem:[#allocation7 + $0x118] sm:$0xff]  ;;  %vm1282_vm6 = vcmask 1045509   ;;  %vm1284_vm7 = vcmask 1046534   ;;  %vm1286_vm8 = vcmask 1047559  }
  0x3a   :  { %1317 = vmatprep.subr.bf16.mxu0 %v1316_v4  ;;  %v1326_v13 = vpack.c.bf16 %v75_v11, %v59_v10  ;;  %v108_v16 = vld [vmem:[#allocation7 + $0x198] sm:$0xff]  ;;  %1325 = vmatprep.subr.bf16.mxu1 %v1324_v8  ;;  %v1320_v17 = vpack.c.bf16 %v106_v14, %v90_v12  ;;  %v89_v19 = vld [vmem:[#allocation7 + $0x100] sm:$0xff]  ;;  %v91_v21 = vld [vmem:[#allocation7 + $0x110] sm:$0xff]  ;;  %vm1289_vm9 = vcmask 130048  }
  0x3b   :  { %1319 = vmatpush1.bf16.msra.mxu0 %v1318_v9  ;;  %v1328_v18 = vpack.c.bf16 %v108_v16, %v92_v15  ;;  %v105_v20 = vld [vmem:[#allocation7 + $0x180] sm:$0xff]  ;;  %v107_v23 = vld [vmem:[#allocation7 + $0x190] sm:$0xff]  ;;  %v62_v24 = vld [vmem:[#allocation7 + $0x28] sm:$0xff] }
  0x3c   :  { %1327 = vmatpush1.bf16.msra.mxu1 %v1326_v13  ;;  %v1322_v22 = vpack.c.bf16 %v105_v20, %v89_v19  ;;  %1321 = vmatprep.subr.bf16.mxu0 %v1320_v17  ;;  %v1330_v25 = vpack.c.bf16 %v107_v23, %v91_v21  ;;  %v1562_v26 = vld [vmem:[#allocation2] sm:$0xff]  ;;  %v78_v27 = vld [vmem:[#allocation7 + $0xa8] sm:$0xff]  ;;  %v64_v28 = vld [vmem:[#allocation7 + $0x38] sm:$0xff] }
  0x3d   :  { %1329 = vmatprep.subr.bf16.mxu1 %v1328_v18  ;;  %v80_v29 = vld [vmem:[#allocation7 + $0xb8] sm:$0xff]  ;;  %v1332_v30 = vpack.c.bf16 %v78_v27, %v62_v24  ;;  %v61_v32 = vld [vmem:[#allocation7 + $0x20] sm:$0xff]  ;;  %v63_v34 = vld [vmem:[#allocation7 + $0x30] sm:$0xff] }
  0x3e   :  { %v1340_v31 = vpack.c.bf16 %v80_v29, %v64_v28  ;;  %v77_v33 = vld [vmem:[#allocation7 + $0xa0] sm:$0xff]  ;;  %v79_v36 = vld [vmem:[#allocation7 + $0xb0] sm:$0xff]  ;;  %v94_v37 = vld [vmem:[#allocation7 + $0x128] sm:$0xff] }
  0x3f   :  { %1323 = vmatpush1.bf16.msra.mxu0 %v1322_v22  ;;  %v1334_v35 = vpack.c.bf16 %v77_v33, %v61_v32  ;;  %v110_v38 = vld [vmem:[#allocation7 + $0x1a8] sm:$0xff]  ;;  %v1342_v39 = vpack.c.bf16 %v79_v36, %v63_v34  ;;  %v96_v41 = vld [vmem:[#allocation7 + $0x138] sm:$0xff]  ;;  %v93_v43 = vld [vmem:[#allocation7 + $0x120] sm:$0xff]  ;;  %v1494_v36 = vmov 1983009808  }
  0x40   :  { %1331 = vmatpush1.bf16.msra.mxu1 %v1330_v25  ;;  %1333 = vmatprep.subr.bf16.mxu0 %v1332_v30  ;;  %v1336_v40 = vpack.c.bf16 %v110_v38, %v94_v37  ;;  %v112_v42 = vld [vmem:[#allocation7 + $0x1b8] sm:$0xff]  ;;  %v109_v45 = vld [vmem:[#allocation7 + $0x1a0] sm:$0xff]  ;;  %v95_v46 = vld [vmem:[#allocation7 + $0x130] sm:$0xff]  ;;  %v696_v37 = vunpack.c.l.s4 %v1494_v36  ;;  %v698_v38 = vlaneseq }
  0x41   :  { %1341 = vmatprep.subr.bf16.mxu1 %v1340_v31  ;;  %v1344_v44 = vpack.c.bf16 %v112_v42, %v96_v41  ;;  %v111_v47 = vld [vmem:[#allocation7 + $0x1b0] sm:$0xff]  ;;  %v66_v48 = vld [vmem:[#allocation7 + $0x48] sm:$0xff]  ;;  %v68_v50 = vld [vmem:[#allocation7 + $0x58] sm:$0xff]  ;;  %v1338_v51 = vpack.c.bf16 %v109_v45, %v93_v43 }
  0x42   :  { %1307 = vmatmul.mubr.msk.f32.vlgmr.msra.gmra.mrb[0].mxu0 %vm121_vm0, %v1562_v26  ;;  %v82_v49 = vld [vmem:[#allocation7 + $0xc8] sm:$0xff]  ;;  %v84_v52 = vld [vmem:[#allocation7 + $0xd8] sm:$0xff]  ;;  %v1346_v53 = vpack.c.bf16 %v111_v47, %v95_v46  ;;  %v65_v55 = vld [vmem:[#allocation7 + $0x40] sm:$0xff]  ;;  %v697_v41 = vunpack.c.0.s8 %v696_v37  ;;  %v1587_v42 = vshrl.u32 %v698_v38, 7 }
  0x43   :  { %1308 = vmatmul.mubr.msk.f32.vlgmr.msra.gmra.mrb[0].mxu1 %vm121_vm0, %v1562_v26  ;;  %1335 = vmatpush1.bf16.msra.mxu0 %v1334_v35  ;;  %v1348_v54 = vpack.c.bf16 %v82_v49, %v66_v48  ;;  %v81_v56 = vld [vmem:[#allocation7 + $0xc0] sm:$0xff]  ;;  %v67_v57 = vld [vmem:[#allocation7 + $0x50] sm:$0xff]  ;;  %v1356_v58 = vpack.c.bf16 %v84_v52, %v68_v50  ;;  %v98_v60 = vld [vmem:[#allocation7 + $0x148] sm:$0xff]  ;;  %v1496_v50 = vmov 1934713408  }
  0x44   :  { %1343 = vmatpush1.bf16.msra.mxu1 %v1342_v39  ;;  %1337 = vmatprep.subr.bf16.mxu0 %v1336_v40  ;;  %v83_v59 = vld [vmem:[#allocation7 + $0xd0] sm:$0xff]  ;;  %v114_v61 = vld [vmem:[#allocation7 + $0x1c8] sm:$0xff]  ;;  %v100_v62 = vld [vmem:[#allocation7 + $0x158] sm:$0xff]  ;;  %v1350_v1 = vpack.c.bf16 %v81_v56, %v65_v55  ;;  %v1495_v39 = vmov 1966171168  }
  0x45   :  { %1345 = vmatprep.subr.bf16.mxu1 %v1344_v44  ;;  %331 = vmatprep.mubr.f32.mxu0 %v1493_v0  ;;  %v116_v63 = vld [vmem:[#allocation7 + $0x1d8] sm:$0xff]  ;;  %v1358_v2 = vpack.c.bf16 %v83_v59, %v67_v57  ;;  %v1352_v3 = vpack.c.bf16 %v114_v61, %v98_v60  ;;  %v97_v4 = vld [vmem:[#allocation7 + $0x140] sm:$0xff]  ;;  %v99_v6 = vld [vmem:[#allocation7 + $0x150] sm:$0xff]  ;;  %v968_v40 = vunpack.c.l.s4 %v1495_v39 }
  0x46   :  { %402 = vmatprep.mubr.f32.mxu1 %v1493_v0  ;;  %v113_v5 = vld [vmem:[#allocation7 + $0x1c0] sm:$0xff]  ;;  %v1360_v7 = vpack.c.bf16 %v116_v63, %v100_v62  ;;  %v115_v8 = vld [vmem:[#allocation7 + $0x1d0] sm:$0xff]  ;;  %v70_v9 = vld [vmem:[#allocation7 + $0x68] sm:$0xff] }
  0x47   :  { %1339 = vmatpush1.bf16.msra.mxu0 %v1338_v51  ;;  %v86_v10 = vld [vmem:[#allocation7 + $0xe8] sm:$0xff]  ;;  %v72_v11 = vld [vmem:[#allocation7 + $0x78] sm:$0xff]  ;;  %v1354_v13 = vpack.c.bf16 %v113_v5, %v97_v4  ;;  %v1362_v14 = vpack.c.bf16 %v115_v8, %v99_v6  ;;  %v69_v16 = vld [vmem:[#allocation7 + $0x60] sm:$0xff]  ;;  %v969_v43 = vunpack.c.0.s8 %v968_v40  ;;  %v760_v51 = vunpack.c.l.s4 %v1496_v50 }
  0x48   :  { %1347 = vmatpush1.bf16.msra.mxu1 %v1346_v53  ;;  %1349 = vmatprep.subr.bf16.mxu0 %v1348_v54  ;;  %v88_v12 = vld [vmem:[#allocation7 + $0xf8] sm:$0xff]  ;;  %v1364_v15 = vpack.c.bf16 %v86_v10, %v70_v9  ;;  %v85_v17 = vld [vmem:[#allocation7 + $0xe0] sm:$0xff]  ;;  %v71_v18 = vld [vmem:[#allocation7 + $0x70] sm:$0xff] }
  0x49   :  { %1357 = vmatprep.subr.bf16.mxu1 %v1356_v58  ;;  %v1372_v19 = vpack.c.bf16 %v88_v12, %v72_v11  ;;  %v87_v20 = vld [vmem:[#allocation7 + $0xf0] sm:$0xff]  ;;  %v102_v21 = vld [vmem:[#allocation7 + $0x168] sm:$0xff]  ;;  %v104_v23 = vld [vmem:[#allocation7 + $0x178] sm:$0xff]  ;;  %v1366_v25 = vpack.c.bf16 %v85_v17, %v69_v16  ;;  %v1593_v45 = vsub.s32 %v969_v43, %v1587_v42  ;;  %v761_v60 = vunpack.c.0.s8 %v760_v51 }
  0x4a   :  { %1309 = vmatmul.mubr.msk.f32.vlgmr.msra.gmra.mrb[2].mxu0 %vm121_vm0, %v1562_v26  ;;  %v118_v22 = vld [vmem:[#allocation7 + $0x1e8] sm:$0xff]  ;;  %v120_v24 = vld [vmem:[#allocation7 + $0x1f8] sm:$0xff]  ;;  %v1374_v27 = vpack.c.bf16 %v87_v20, %v71_v18  ;;  %v101_v29 = vld [vmem:[#allocation7 + $0x160] sm:$0xff]  ;;  %v1615_v16 = vsub.s32 0, %v1587_v42 }
  0x4b   :  { %1310 = vmatmul.mubr.msk.f32.vlgmr.msra.gmra.mrb[2].mxu1 %vm121_vm0, %v1562_v26  ;;  %1351 = vmatpush1.bf16.msra.mxu0 %v1350_v1  ;;  %v1368_v28 = vpack.c.bf16 %v118_v22, %v102_v21  ;;  %v117_v30 = vld [vmem:[#allocation7 + $0x1e0] sm:$0xff]  ;;  %v1376_v31 = vpack.c.bf16 %v120_v24, %v104_v23  ;;  %v103_v32 = vld [vmem:[#allocation7 + $0x170] sm:$0xff]  ;;  %v1595_v54 = vld [vmem:[#allocation5] sm:$0xff]  ;;  %v1609_v12 = vsub.s32 %v761_v60, %v1587_v42 }
  0x4c   :  { %1359 = vmatpush1.bf16.msra.mxu1 %v1358_v2  ;;  %1353 = vmatprep.subr.bf16.mxu0 %v1352_v3  ;;  %v119_v33 = vld [vmem:[#allocation7 + $0x1f0] sm:$0xff]  ;;  %v1370_v34 = vpack.c.bf16 %v117_v30, %v101_v29  ;;  %v973_v57 = vrot.slane %v1595_v54, %v1593_v45  ;;  %v966_v20 = vcombine.high %v1595_v54, %v1595_v54 }
  0x4d   :  { %1361 = vmatprep.subr.bf16.mxu1 %v1360_v7  ;;  %473 = vmatprep.mubr.f32.mxu0 %v1493_v0  ;;  %v1378_v35 = vpack.c.bf16 %v119_v33, %v103_v32 }
  0x4e   :  { %544 = vmatprep.mubr.f32.mxu1 %v1493_v0  ;;  %v981_v3 = vcombine.high %v973_v57, %v973_v57  ;;  %v989_v9 = vrot.slane %v973_v57, %v1593_v45 }
  0x4f   :  { %1355 = vmatpush1.bf16.msra.mxu0 %v1354_v13 }
  0x50   :  { %1363 = vmatpush1.bf16.msra.mxu1 %v1362_v14  ;;  %1365 = vmatprep.subr.bf16.mxu0 %v1364_v15  ;;  %v1003_v15 = vrot.slane %v981_v3, %v1593_v45  ;;  %v1626_v29 = vrot.slane %v989_v9, %v1615_v16  ;;  %v980_v3 = vrot.slane %v966_v20, %v1593_v45 }
  0x51   :  { %1373 = vmatprep.subr.bf16.mxu1 %v1372_v19  ;;  %v1011_v19 = vcombine.high %v989_v9, %v989_v9 }
  0x52   :  { %1311 = vmatmul.mubr.msk.f32.vlgmr.msra.gmra.mrb[4].mxu0 %vm121_vm0, %v1562_v26  ;;  %v1013_v30 = vcombine.high %v1003_v15, %v1003_v15 }
  0x53   :  { %1312 = vmatmul.mubr.msk.f32.vlgmr.msra.gmra.mrb[4].mxu1 %vm121_vm0, %v1562_v26  ;;  %1367 = vmatpush1.bf16.msra.mxu0 %v1366_v25 }
  0x54   :  { %1375 = vmatpush1.bf16.msra.mxu1 %v1374_v27  ;;  %1369 = vmatprep.subr.bf16.mxu0 %v1368_v28  ;;  %v1623_v28 = vrot.slane %v1003_v15, %v1615_v16 }
  0x55   :  { %1377 = vmatprep.subr.bf16.mxu1 %v1376_v31  ;;  %615 = vmatprep.mubr.f32.mxu0 %v1493_v0 }
  0x56   :  { %686 = vmatprep.mubr.f32.mxu1 %v1493_v0  ;;  %v1590_v0 = vsub.s32 %v697_v41, %v1587_v42 }
  0x57   :  { %1371 = vmatpush1.bf16.msra.mxu0 %v1370_v34 }
  0x58   :  { %1379 = vmatpush1.bf16.msra.mxu1 %v1378_v35 }
  0x5a   :  { %1313 = vmatmul.mubr.msk.f32.vlgmr.msra.gmra.mrb[6].mxu0 %vm121_vm0, %v1562_v26 }
  0x5b   :  { %1314 = vmatmul.mubr.msk.f32.vlgmr.msra.gmra.mrb[6].mxu1 %vm121_vm0, %v1562_v26 }
 0x115   :  { %v191_v44 = vpop.f32.mrb[0].mxu0 }
 0x116   :  { %v262_v46 = vpop.f32.mrb[0].mxu1  ;;  %v193_v47 = vpop.f32.mrb[1].mxu0 }
 0x117   :  { %v693_v26 = vcombine.low %v191_v44, %v262_v46  ;;  %v694_v48 = vcombine.high %v191_v44, %v262_v46  ;;  %v264_v49 = vpop.f32.mrb[1].mxu1 }
 0x118   :  { %v709_v52 = vcombine.low %v193_v47, %v264_v49  ;;  %v710_v53 = vcombine.high %v193_v47, %v264_v49 }
 0x119   :  { %v701_v55 = vrot.slane %v693_v26, %v1590_v0  ;;  %v1599_v56 = vrot.slane %v694_v48, %v1590_v0 }
 0x11a   :  { %v717_v58 = vrot.slane %v709_v52, %v1590_v0  ;;  %v724_v59 = vrot.slane %v710_v53, %v1590_v0 }
 0x11c   :  { %v757_v61 = vcombine.low %v701_v55, %v717_v58  ;;  %v758_v62 = vcombine.high %v701_v55, %v717_v58  ;;  %v773_v63 = vcombine.low %v1599_v56, %v724_v59  ;;  %v774_v1 = vcombine.high %v1599_v56, %v724_v59 }
 0x11d   :  { %v333_v2 = vpop.f32.mrb[2].mxu0  ;;  %v1647_v56 = vrot.slane %v1011_v19, %v1615_v16  ;;  %v982_v19 = vcombine.high %v980_v3, %v980_v3 }
 0x11e   :  { %v404_v4 = vpop.f32.mrb[2].mxu1  ;;  %v335_v5 = vpop.f32.mrb[3].mxu0  ;;  %v765_v27 = vrot.slane %v757_v61, %v1609_v12  ;;  %v772_v34 = vrot.slane %v758_v62, %v1609_v12  ;;  %v1632_v36 = vrot.slane %v773_v63, %v1609_v12  ;;  %v1654_v59 = vrot.slane %v774_v1, %v1609_v12 }
 0x11f   :  { %v725_v6 = vcombine.low %v333_v2, %v404_v4  ;;  %v726_v7 = vcombine.high %v333_v2, %v404_v4  ;;  %v406_v8 = vpop.f32.mrb[3].mxu1 }
 0x120   :  { %v741_v10 = vcombine.low %v335_v5, %v406_v8  ;;  %v742_v11 = vcombine.high %v335_v5, %v406_v8 }
 0x121   :  { %v733_v13 = vrot.slane %v725_v6, %v1590_v0  ;;  %v740_v14 = vrot.slane %v726_v7, %v1590_v0 }
 0x122   :  { %v749_v17 = vrot.slane %v741_v10, %v1590_v0  ;;  %v756_v18 = vrot.slane %v742_v11, %v1590_v0  ;;  %v1030_v11 = vrot.slane %v1013_v30, %v1615_v16 }
 0x124   :  { %v789_v21 = vcombine.low %v733_v13, %v749_v17  ;;  %v790_v22 = vcombine.high %v733_v13, %v749_v17  ;;  %v805_v23 = vcombine.low %v740_v14, %v756_v18  ;;  %v806_v24 = vcombine.high %v740_v14, %v756_v18 }
 0x125   :  { %v475_v25 = vpop.f32.mrb[4].mxu0  ;;  %v996_v18 = vrot.slane %v980_v3, %v1593_v45 }
 0x126   :  { %v546_v31 = vpop.f32.mrb[4].mxu1  ;;  %v477_v32 = vpop.f32.mrb[5].mxu0  ;;  %v797_v33 = vrot.slane %v789_v21, %v1609_v12  ;;  %v804_v35 = vrot.slane %v790_v22, %v1609_v12  ;;  %v1635_v41 = vrot.slane %v805_v23, %v1609_v12  ;;  %v1638_v43 = vrot.slane %v806_v24, %v1609_v12 }
 0x127   :  { %v829_v37 = vcombine.low %v475_v25, %v546_v31  ;;  %v830_v39 = vcombine.high %v475_v25, %v546_v31  ;;  %v548_v40 = vpop.f32.mrb[5].mxu1  ;;  %v1034_v23 = vrot.slane %v996_v18, %v1615_v16  ;;  %v1010_v31 = vrot.slane %v982_v19, %v1593_v45 }
 0x128   :  { %v845_v44 = vcombine.low %v477_v32, %v548_v40  ;;  %v846_v46 = vcombine.high %v477_v32, %v548_v40  ;;  %v822_v47 = vcombine.high %v765_v27, %v797_v33  ;;  %v821_v26 = vcombine.low %v765_v27, %v797_v33 }
 0x129   :  { %v837_v48 = vrot.slane %v829_v37, %v1590_v0  ;;  %v844_v49 = vrot.slane %v830_v39, %v1590_v0  ;;  %v823_v50 = vcombine.low %v772_v34, %v804_v35  ;;  %v824_v51 = vcombine.high %v772_v34, %v804_v35 }
 0x12a   :  { %v853_v52 = vrot.slane %v845_v44, %v1590_v0  ;;  %v860_v53 = vrot.slane %v846_v46, %v1590_v0  ;;  %v1057_v54 = vmul.f32 %v1623_v28, %v822_v47  ;;  %v1055_v55 = vmul.f32 %v1626_v29, %v821_v26 }
 0x12b   :  { %v825_v57 = vcombine.low %v1632_v36, %v1635_v41  ;;  %v826_v58 = vcombine.high %v1632_v36, %v1635_v41  ;;  %v827_v4 = vcombine.low %v1654_v59, %v1638_v43  ;;  %v828_v5 = vcombine.high %v1654_v59, %v1638_v43 }
 0x12c   :  { %v893_v60 = vcombine.low %v837_v48, %v853_v52  ;;  %v894_v61 = vcombine.high %v837_v48, %v853_v52  ;;  %v909_v62 = vcombine.low %v844_v49, %v860_v53  ;;  %v910_v63 = vcombine.high %v844_v49, %v860_v53  ;;  %1075 = vadd.xlane.f32.xlu1 %v1057_v54 }
 0x12d   :  { %1071 = vadd.xlane.f32.xlu0 %v1055_v55  ;;  %v617_v2 = vpop.f32.mrb[6].mxu0  ;;  %v1059_v10 = vmul.f32 %v1647_v56, %v823_v50  ;;  %v1061_v22 = vmul.f32 %v1030_v11, %v824_v51  ;;  %v1063_v39 = vmul.f32 %v1034_v23, %v825_v57  ;;  %v1038_v40 = vrot.slane %v1010_v31, %v1615_v16 }
 0x12e   :  { %v688_v6 = vpop.f32.mrb[6].mxu1  ;;  %v619_v7 = vpop.f32.mrb[7].mxu0  ;;  %v901_v32 = vrot.slane %v893_v60, %v1609_v12  ;;  %v908_v33 = vrot.slane %v894_v61, %v1609_v12  ;;  %v917_v34 = vrot.slane %v909_v62, %v1609_v12  ;;  %v1012_v41 = vcombine.high %v996_v18, %v996_v18 }
 0x12f   :  { %v861_v8 = vcombine.low %v617_v2, %v688_v6  ;;  %v862_v1 = vcombine.high %v617_v2, %v688_v6  ;;  %v690_v9 = vpop.f32.mrb[7].mxu1  ;;  %v924_v45 = vrot.slane %v910_v63, %v1609_v12  ;;  %v1065_v52 = vmul.f32 %v1038_v40, %v826_v58 }
 0x130   :  { %v877_v13 = vcombine.low %v619_v7, %v690_v9  ;;  %v878_v14 = vcombine.high %v619_v7, %v690_v9  ;;  %v1042_v53 = vrot.slane %v1012_v41, %v1615_v16  ;;  %v1014_v54 = vcombine.high %v1010_v31, %v1010_v31 }
 0x131   :  { %v869_v15 = vrot.slane %v861_v8, %v1590_v0  ;;  %v876_v17 = vrot.slane %v862_v1, %v1590_v0  ;;  %1079 = vadd.xlane.f32.xlu0 %v1059_v10 }
 0x132   :  { %v885_v20 = vrot.slane %v877_v13, %v1590_v0  ;;  %v892_v21 = vrot.slane %v878_v14, %v1590_v0  ;;  %v1046_v57 = vrot.slane %v1014_v54, %v1615_v16  ;;  %v1315_v16 = vld [vmem:[%s1718_s3] ss:$0 sm:$0xff]  ;;  %s1498_s3 = smov [#allocation8]  }
 0x133   :  { %s1297_s26 = sshll.u32 %s1498_s3, 4  ;;  %s1298_s26 = int_to_ptr.vmem [resolvable:$true] %s1297_s26 }
 0x134   :  { %v925_v24 = vcombine.low %v869_v15, %v885_v20  ;;  %v926_v25 = vcombine.high %v869_v15, %v885_v20  ;;  %v941_v27 = vcombine.low %v876_v17, %v892_v21  ;;  %v942_v30 = vcombine.high %v876_v17, %v892_v21  ;;  %s1460_s27 = scalar_lea.vmem %s1298_s26, 128  ;;  %p1465_p11 = scmp.lt.s32.totalorder %s1298_s26, %s1298_s26 }
 0x135   :  { %1083 = vadd.xlane.f32.xlu0 %v1061_v22  ;;  %v1069_v60 = vmul.f32 %v1046_v57, %v828_v5  ;;  %p1461_p10 = scmp.ne.s32.totalorder %s1298_s26, %s1460_s27  ;;  %p1466_p12 = scmp.lt.s32.totalorder %s1460_s27, %s1460_s27 }
 0x136   :  { %v933_v35 = vrot.slane %v925_v24, %v1609_v12  ;;  %v940_v0 = vrot.slane %v926_v25, %v1609_v12  ;;  %v949_v36 = vrot.slane %v941_v27, %v1609_v12  ;;  %v956_v37 = vrot.slane %v942_v30, %v1609_v12 }
 0x137   :  { %v1067_v12 = vmul.f32 %v1042_v53, %v827_v4  ;;  %p1467_p13 = por %p1466_p12, %p1465_p11 }
 0x138   :  { %v958_v43 = vcombine.high %v901_v32, %v933_v35  ;;  %v959_v44 = vcombine.low %v908_v33, %v940_v0  ;;  %v960_v46 = vcombine.high %v908_v33, %v940_v0  ;;  %v961_v47 = vcombine.low %v917_v34, %v949_v36 }
 0x139   :  { %1087 = vadd.xlane.f32.xlu0 %v1063_v39  ;;  %v957_v26 = vcombine.low %v901_v32, %v933_v35  ;;  %v962_v48 = vcombine.high %v917_v34, %v949_v36  ;;  %v963_v49 = vcombine.low %v924_v45, %v956_v37  ;;  %v964_v50 = vcombine.high %v924_v45, %v956_v37  ;;  %p1468_p0 = pnand %p1467_p13, %p1461_p10 }
 0x13a   :  { %v1058_v51 = vmul.f32 %v1623_v28, %v958_v43  ;;  %v1060_v55 = vmul.f32 %v1647_v56, %v959_v44  ;;  %v1062_v59 = vmul.f32 %v1030_v11, %v960_v46  ;;  %v1064_v61 = vmul.f32 %v1034_v23, %v961_v47 }
 0x13b   :  { %v1056_v28 = vmul.f32 %v1626_v29, %v957_v26  ;;  %v1066_v58 = vmul.f32 %v1038_v40, %v962_v48  ;;  %v1068_v62 = vmul.f32 %v1042_v53, %v963_v49  ;;  %v1070_v63 = vmul.f32 %v1046_v57, %v964_v50 }
 0x13c   :  { %1077 = vadd.xlane.f32.xlu1 %v1058_v51  ;;  %v1497_v56 = vmov 0   ;;  %v1199_v46 = vand.u32 127, %v698_v38 }
 0x13d   :  { %1091 = vadd.xlane.f32.xlu0 %v1065_v52  ;;  %1391 = vset.pattern.permute.xlu1 %v1497_v56 }
 0x13e   :  { %1392 = vset.pattern.permute.xlu0 %v1497_v56  ;;  %v1204_v26 = vadd.s32 4294967288, %v1199_v46  ;;  %v1202_v52 = vsub.s32 %v1199_v46, %v1587_v42 }
 0x140   :  { %1081 = vadd.xlane.f32.xlu1 %v1060_v55  ;;  %v1207_v50 = vsub.s32 %v1204_v26, %v1587_v42 }
 0x141   :  { %1095 = vadd.xlane.f32.xlu0 %v1067_v12 }
 0x144   :  { %1085 = vadd.xlane.f32.xlu1 %v1062_v59 }
 0x145   :  { %1099 = vadd.xlane.f32.xlu0 %v1069_v60 }
 0x148   :  { %1089 = vadd.xlane.f32.xlu1 %v1064_v61 }
 0x149   :  { %1073 = vadd.xlane.f32.xlu0 %v1056_v28 }
 0x14c   :  { %1093 = vadd.xlane.f32.xlu1 %v1066_v58 }
 0x150   :  { %1097 = vadd.xlane.f32.xlu1 %v1068_v62 }
 0x154   :  { %1101 = vadd.xlane.f32.xlu1 %v1070_v63 }
 0x15f   :  { %1110 = vbcast.lane.b32.xlu0 %v1315_v16, 256 }
 0x165   :  { %1114 = vbcast.lane.b32.xlu1 %v1315_v16, 264 }
 0x1b9   :  { %v1076_v4 = vpop.xlane.xlu1 %1075 }
 0x1ba   :  { %v1072_v2 = vpop.xlane.xlu0 %1071 }
 0x1be   :  { %v1080_v3 = vpop.xlane.xlu0 %1079 }
 0x1c2   :  { %v1084_v29 = vpop.xlane.xlu0 %1083 }
 0x1c6   :  { %v1088_v5 = vpop.xlane.xlu0 %1087 }
 0x1c9   :  { %v1078_v6 = vpop.xlane.xlu1 %1077 }
 0x1ca   :  { %v1092_v7 = vpop.xlane.xlu0 %1091 }
 0x1cd   :  { %v1082_v8 = vpop.xlane.xlu1 %1081 }
 0x1ce   :  { %v1096_v1 = vpop.xlane.xlu0 %1095 }
 0x1d1   :  { %v1086_v9 = vpop.xlane.xlu1 %1085 }
 0x1d2   :  { %v1100_v10 = vpop.xlane.xlu0 %1099 }
 0x1d5   :  { %v1090_v11 = vpop.xlane.xlu1 %1089 }
 0x1d6   :  { %v1074_v13 = vpop.xlane.xlu0 %1073 }
 0x1d9   :  { %v1094_v14 = vpop.xlane.xlu1 %1093 }
 0x1da   :  { %v1111_v15 = vpop.permute.xlu0 %1110 }
 0x1db   :  { %v1120_v17 = vadd.f32 %v1111_v15, %v1076_v4  ;;  %v1118_v18 = vadd.f32 %v1111_v15, %v1072_v2  ;;  %v1122_v20 = vadd.f32 %v1111_v15, %v1080_v3  ;;  %v1124_v22 = vadd.f32 %v1111_v15, %v1084_v29 }
 0x1dc   :  { %v1126_v25 = vadd.f32 %v1111_v15, %v1088_v5  ;;  %v1128_v30 = vadd.f32 %v1111_v15, %v1092_v7  ;;  %v1130_v0 = vadd.f32 %v1111_v15, %v1096_v1  ;;  %v1132_v37 = vadd.f32 %v1111_v15, %v1100_v10 }
 0x1dd   :  { %1157 = vperm.xlu0 %1392, %v1120_v17   ;;  %1151 = vperm.xlu1 %1391, %v1118_v18   ;;  %v1098_v19 = vpop.xlane.xlu1 %1097 }
 0x1e1   :  { %1163 = vperm.xlu1 %1391, %v1122_v20   ;;  %v1102_v21 = vpop.xlane.xlu1 %1101 }
 0x1e5   :  { %1169 = vperm.xlu1 %1391, %v1124_v22   ;;  %v1115_v23 = vpop.permute.xlu1 %1114 }
 0x1e6   :  { %v1123_v24 = vadd.f32 %v1115_v23, %v1082_v8  ;;  %v1125_v27 = vadd.f32 %v1115_v23, %v1086_v9  ;;  %v1127_v31 = vadd.f32 %v1115_v23, %v1090_v11  ;;  %v1119_v32 = vadd.f32 %v1115_v23, %v1074_v13 }
 0x1e7   :  { %v1129_v33 = vadd.f32 %v1115_v23, %v1094_v14  ;;  %v1121_v34 = vadd.f32 %v1115_v23, %v1078_v6  ;;  %v1131_v35 = vadd.f32 %v1115_v23, %v1098_v19  ;;  %v1133_v36 = vadd.f32 %v1115_v23, %v1102_v21 }
 0x1e8   :  { %1166 = vperm.xlu0 %1392, %v1123_v24  }
 0x1e9   :  { %1175 = vperm.xlu1 %1391, %v1126_v25  }
 0x1ec   :  { %1172 = vperm.xlu0 %1392, %v1125_v27  }
 0x1ed   :  { %1181 = vperm.xlu1 %1391, %v1128_v30  }
 0x1f0   :  { %1178 = vperm.xlu0 %1392, %v1127_v31  }
 0x1f1   :  { %1154 = vperm.xlu1 %1391, %v1119_v32  }
 0x1f4   :  { %1184 = vperm.xlu0 %1392, %v1129_v33  }
 0x1f5   :  { %1160 = vperm.xlu1 %1391, %v1121_v34  }
 0x1f8   :  { %1190 = vperm.xlu0 %1392, %v1131_v35  }
 0x1f9   :  { %1187 = vperm.xlu1 %1391, %v1130_v0  }
 0x1fc   :  { %1196 = vperm.xlu0 %1392, %v1133_v36  }
 0x1fd   :  { %1193 = vperm.xlu1 %1391, %v1132_v37  }
 0x25c   :  { %v1152_v39 = vpop.permute.xlu1 %1151  ;;  %v1158_v41 = vpop.permute.xlu0 %1157 }
 0x25d   :  { %v1214_v57 = vrot.slane %v1158_v41, %v1202_v52  ;;  %v1203_v59 = vrot.slane %v1152_v39, %v1202_v52 }
 0x260   :  { %v1164_v40 = vpop.permute.xlu1 %1163 }
 0x261   :  { %v1223_v61 = vrot.slane %v1164_v40, %v1202_v52 }
 0x264   :  { %v1170_v45 = vpop.permute.xlu1 %1169 }
 0x265   :  { %v1232_v58 = vrot.slane %v1170_v45, %v1202_v52 }
 0x267   :  { %v1167_v43 = vpop.permute.xlu0 %1166 }
 0x268   :  { %v1176_v44 = vpop.permute.xlu1 %1175  ;;  %v1227_v55 = vrot.slane %v1167_v43, %v1207_v50 }
 0x269   :  { %v1241_v2 = vrot.slane %v1176_v44, %v1202_v52 }
 0x26a   :  { %v1228_v16 = vsel %vm1209_vm1, %v1227_v55, %v1223_v61 }
 0x26b   :  { %v1173_v47 = vpop.permute.xlu0 %1172 }
 0x26c   :  { %v1182_v48 = vpop.permute.xlu1 %1181  ;;  %v1236_v38 = vrot.slane %v1173_v47, %v1207_v50 }
 0x26d   :  { %v1250_v6 = vrot.slane %v1182_v48, %v1202_v52 }
 0x26e   :  { %v1237_v5 = vsel %vm1209_vm1, %v1236_v38, %v1232_v58 }
 0x26f   :  { %v1179_v49 = vpop.permute.xlu0 %1178 }
 0x270   :  { %v1155_v51 = vpop.permute.xlu1 %1154  ;;  %v1245_v28 = vrot.slane %v1179_v49, %v1207_v50 }
 0x271   :  { %v1208_v53 = vrot.slane %v1155_v51, %v1207_v50 }
 0x272   :  { %v1246_v1 = vsel %vm1209_vm1, %v1245_v28, %v1241_v2 }
 0x273   :  { %v1185_v54 = vpop.permute.xlu0 %1184  ;;  %v1210_v62 = vsel %vm1209_vm1, %v1208_v53, %v1203_v59 }
 0x274   :  { %v1161_v12 = vpop.permute.xlu1 %1160  ;;  %v1254_v42 = vrot.slane %v1185_v54, %v1207_v50 }
 0x275   :  { %v1218_v60 = vrot.slane %v1161_v12, %v1207_v50 }
 0x276   :  { %v1255_v10 = vsel %vm1209_vm1, %v1254_v42, %v1250_v6 }
 0x277   :  { %v1219_v63 = vsel %vm1209_vm1, %v1218_v60, %v1214_v57  ;;  %v1191_v56 = vpop.permute.xlu0 %1190 }
 0x278   :  { %v1275_v3 = vsel %vm1274_vm2, %v1219_v63, %v1210_v62  ;;  %v1263_v29 = vrot.slane %v1191_v56, %v1207_v50  ;;  %v1188_v4 = vpop.permute.xlu1 %1187 }
 0x279   :  { %v1277_v7 = vsel %vm1276_vm3, %v1228_v16, %v1275_v3  ;;  %v1259_v8 = vrot.slane %v1188_v4, %v1202_v52 }
 0x27a   :  { %v1279_v9 = vsel %vm1278_vm4, %v1237_v5, %v1277_v7 }
 0x27b   :  { %v1197_v11 = vpop.permute.xlu0 %1196  ;;  %v1281_v13 = vsel %vm1280_vm5, %v1246_v1, %v1279_v9  ;;  %v1264_v14 = vsel %vm1209_vm1, %v1263_v29, %v1259_v8 }
 0x27c   :  { %v1272_v15 = vrot.slane %v1197_v11, %v1207_v50  ;;  %v1194_v17 = vpop.permute.xlu1 %1193  ;;  %v1283_v18 = vsel %vm1282_vm6, %v1255_v10, %v1281_v13 }
 0x27d   :  { %v1268_v19 = vrot.slane %v1194_v17, %v1202_v52  ;;  %v1285_v21 = vsel %vm1284_vm7, %v1264_v14, %v1283_v18 }
 0x27f   :  { %v1273_v20 = vsel %vm1209_vm1, %v1272_v15, %v1268_v19 }
 0x280   :  { %v1287_v22 = vsel %vm1286_vm8, %v1273_v20, %v1285_v21 }
 0x281   :  { %1290 = vst.msk [vmem:[#allocation8] sm:$0xff] %vm1289_vm9, %v1287_v22 }
 0x282   :  { %1471 = shalt.err (!%p1468_p0)
}
 0x283   :  { %s1472_s30 = scalar_lea.hbm %s1719_s4, 128 }
 0x284   :  { %p1473_p1 = scmp.ne.s32.totalorder %s1719_s4, %s1472_s30  ;;  %p1476_p2 = scmp.lt.u32.totalorder %s1472_s30, %s1719_s4 }
 0x286   :  { %p1478_p3 = pnand %p1476_p2, %p1473_p1 }
 0x288   :  { %1481 = shalt.err (!%p1478_p3)
}
 0x289   :  { %1300 = dma.vmem_to_hbm [thread:$0]  %s1298_s26, 128, %s1719_s4, [#allocation4]  }
 0x28a   :  { %1486 = dma.done.wait [#allocation4], 128  }
 0x28b   :  { %1487 = vsyncadd [#allocation4], 4294967168 }
 0x28c   :  { %1304 = vsyncpa [#allocation3], 1 }
 0x28d   :  { %1305 = vsyncpa [#allocation6], 1 }
 0x28e   :  { %1306 = vsyncpa [#allocation4], 1 }

</bundles_post_ra>
